<compile_context>
chip_gen: v6e
topology: v6e:2x2x1
jax: 0.10.0
libtpu: 0.0.40
codegen_flags: <defaults>
</compile_context>

<pallas_src>
import functools

import jax
import jax.numpy as jnp
from jax.experimental import pallas as pl
from jax.experimental.pallas import tpu as pltpu

MXU_DTYPE = jnp.bfloat16
_MXU_ELT = jnp.dtype(MXU_DTYPE).itemsize


# ---------------------------------------------------------------- helpers ---

def _pick_tile(dim, target, align):
    """Largest tile <= target that is a multiple of `align` and divides `dim`;
    small dims use the full extent (always a legal block shape)."""
    if dim <= target:
        return dim
    t = (target // align) * align
    while t >= align:
        if dim % t == 0:
            return t
        t -= align
    # TODO(synk): pad/mask ragged edge tiles instead of a full-dim fallback.
    return dim


def _vmem_limit(footprint_bytes):
    # Per review: size from the real footprint + headroom, never claim the
    # whole 64 MiB physical VMEM of a v7x TensorCore.
    return int(min(max(2 * footprint_bytes + (4 << 20), 16 << 20), 48 << 20))


# ------------------------------------------- fused two-layer MLP (primary) ---

def _fused_mlp_kernel(x_ref, w1_ref, b1_ref, w2_ref, b2_ref, o_ref):
    # Layer 1: f32 accumulation, fused bias + ReLU, hidden stays on-chip.
    h = jnp.dot(x_ref[...], w1_ref[...], preferred_element_type=jnp.float32)
    h = jnp.maximum(h + b1_ref[...], 0.0)
    # Layer 2: re-quantize hidden to bf16 for the MXU, f32 epilogue.
    y = jnp.dot(h.astype(w2_ref.dtype), w2_ref[...],
                preferred_element_type=jnp.float32)
    y = jnp.maximum(y + b2_ref[...], 0.0)
    o_ref[...] = y.astype(o_ref.dtype)


def _fused_mlp(x, w1, b1, w2, b2, *, tm_target=256):
    M, K1 = x.shape
    H = w1.shape[1]
    N2 = w2.shape[1]

    tm = _pick_tile(M, tm_target, 8)
    grid = (M // tm,)

    footprint = (
        2 * tm * K1 * _MXU_ELT            # double-buffered x tile
        + K1 * H * _MXU_ELT               # resident w1
        + H * N2 * _MXU_ELT               # resident w2
        + (H + N2) * 4                    # biases (f32)
        + 2 * tm * N2 * 4                 # double-buffered output tile
        + tm * H * 4                      # hidden activation (f32, on-chip)
    )
    flops = 2 * M * K1 * H + 2 * M * H * N2
    bytes_accessed = ((M * K1 + K1 * H + H * N2) * _MXU_ELT
                      + (H + N2) * 4 + M * N2 * 4)

    return pl.pallas_call(
        _fused_mlp_kernel,
        out_shape=jax.ShapeDtypeStruct((M, N2), jnp.float32),
        grid_spec=pltpu.PrefetchScalarGridSpec(
            num_scalar_prefetch=0,
            grid=grid,
            in_specs=[
                pl.BlockSpec((tm, K1), lambda i: (i, 0)),
                # weight/bias blocks are grid-invariant -> VMEM-resident
                pl.BlockSpec((K1, H), lambda i: (0, 0)),
                pl.BlockSpec((1, H), lambda i: (0, 0)),
                pl.BlockSpec((H, N2), lambda i: (0, 0)),
                pl.BlockSpec((1, N2), lambda i: (0, 0)),
            ],
            out_specs=pl.BlockSpec((tm, N2), lambda i: (i, 0)),
        ),
        compiler_params=pltpu.CompilerParams(
            dimension_semantics=("parallel",),
            vmem_limit_bytes=_vmem_limit(footprint),
        ),
        cost_estimate=pl.CostEstimate(
            flops=flops, transcendentals=0, bytes_accessed=bytes_accessed),
    )(x, w1, b1, w2, b2)


# --------------------------- tiled dense fallback (weights too big for VMEM) ---

def _dense_kernel(x_ref, w_ref, b_ref, o_ref, acc_ref, *, activation):
    @pl.when(pl.program_id(2) == 0)
    def _init():
        acc_ref[...] = jnp.zeros_like(acc_ref)

    acc_ref[...] += jnp.dot(x_ref[...], w_ref[...],
                            preferred_element_type=jnp.float32)

    @pl.when(pl.program_id(2) == pl.num_programs(2) - 1)
    def _finalize():
        y = acc_ref[...] + b_ref[...]          # f32 bias add
        if activation == "relu":
            y = jnp.maximum(y, 0.0)
        o_ref[...] = y.astype(o_ref.dtype)


def dense(x, w, b, activation="relu", out_dtype=jnp.float32,
          *, tm=256, tn=512, tk=512):
    M, K = x.shape
    Kw, N = w.shape
    assert K == Kw, (x.shape, w.shape)

    tm = _pick_tile(M, tm, 16)     # bf16 sublane packing
    tn = _pick_tile(N, tn, 128)    # lane-dense output tile
    tk = _pick_tile(K, tk, 128)
    grid = (M // tm, N // tn, K // tk)

    x_mx = x if x.dtype == MXU_DTYPE else x.astype(MXU_DTYPE)
    w_mx = w if w.dtype == MXU_DTYPE else w.astype(MXU_DTYPE)
    b2 = b.reshape(1, N).astype(jnp.float32)

    footprint = (2 * tm * tk * _MXU_ELT + 2 * tk * tn * _MXU_ELT
                 + 2 * tn * 4 + 2 * tm * tn * jnp.dtype(out_dtype).itemsize
                 + tm * tn * 4)
    flops = 2 * M * N * K
    bytes_accessed = ((M * K + K * N) * _MXU_ELT + N * 4
                      + M * N * jnp.dtype(out_dtype).itemsize)

    return pl.pallas_call(
        functools.partial(_dense_kernel, activation=activation),
        out_shape=jax.ShapeDtypeStruct((M, N), out_dtype),
        grid_spec=pltpu.PrefetchScalarGridSpec(
            num_scalar_prefetch=0,
            grid=grid,
            in_specs=[
                pl.BlockSpec((tm, tk), lambda i, j, k: (i, k)),
                pl.BlockSpec((tk, tn), lambda i, j, k: (k, j)),
                pl.BlockSpec((1, tn), lambda i, j, k: (0, j)),
            ],
            out_specs=pl.BlockSpec((tm, tn), lambda i, j, k: (i, j)),
            scratch_shapes=[pltpu.VMEM((tm, tn), jnp.float32)],
        ),
        compiler_params=pltpu.CompilerParams(
            dimension_semantics=("parallel", "parallel", "arbitrary"),
            vmem_limit_bytes=_vmem_limit(footprint),
        ),
        cost_estimate=pl.CostEstimate(
            flops=flops, transcendentals=0, bytes_accessed=bytes_accessed),
    )(x_mx, w_mx, b2)


# ------------------------------------------------- MLP params + forward ---

def init_params(key, input_size, output_size, hidden_size):
    k1, k2 = jax.random.split(key)

    def xavier(k, shape):
        fan_in, fan_out = shape
        bound = (6.0 / (fan_in + fan_out)) ** 0.5
        return jax.random.uniform(k, shape, jnp.float32, -bound, bound)

    # Weights stored in bf16 once (no per-forward cast); biases stay f32.
    return {
        "w1": xavier(k1, (input_size, hidden_size)).astype(MXU_DTYPE),
        "b1": jnp.zeros((hidden_size,), jnp.float32),
        "w2": xavier(k2, (hidden_size, output_size)).astype(MXU_DTYPE),
        "b2": jnp.zeros((output_size,), jnp.float32),
    }


# Weights + biases below this budget -> single fused-VMEM-resident kernel.
_FUSE_WEIGHT_BUDGET_BYTES = 8 << 20


def mlp_forward(params, din):
    w1, b1, w2, b2 = params["w1"], params["b1"], params["w2"], params["b2"]
    K1, H = w1.shape
    N2 = w2.shape[1]

    lead = din.shape[:-1]
    x = din.reshape(-1, K1).astype(MXU_DTYPE)

    weight_bytes = (K1 * H + H * N2) * _MXU_ELT + (H + N2) * 4
    if weight_bytes <= _FUSE_WEIGHT_BUDGET_BYTES:
        out = _fused_mlp(x, w1, b1.reshape(1, H), w2, b2.reshape(1, N2))
    else:
        # Fallback: two tiled calls; hidden activation written/read as bf16.
        h = dense(x, w1, b1, activation="relu", out_dtype=MXU_DTYPE)
        out = dense(h, w2, b2, activation="relu", out_dtype=jnp.float32)

    return out.reshape(lead + (N2,))


# ------------------------------------------------- demo / self-check ---

if __name__ == "__main__":
    B, IN_SIZE, HIDDEN, OUT_SIZE = 2, 32, 64, 32

    key = jax.random.PRNGKey(0)
    k_params, k_x = jax.random.split(key)
    params = init_params(k_params, IN_SIZE, OUT_SIZE, HIDDEN)
    din = jax.random.normal(k_x, (B, IN_SIZE), dtype=jnp.float32)

    out = jax.block_until_ready(mlp_forward(params, din))

    # pure-JAX reference using the same bf16 weights (f32 math)
    w1f = params["w1"].astype(jnp.float32)
    w2f = params["w2"].astype(jnp.float32)
    ref = jnp.maximum(din @ w1f + params["b1"], 0.0)
    ref = jnp.maximum(ref @ w2f + params["b2"], 0.0)

    assert out.shape == (B, OUT_SIZE), out.shape
    assert bool(jnp.all(jnp.isfinite(out)))
    # bf16 MXU inputs with f32 accumulation -> loose tolerance
    assert bool(jnp.allclose(out, ref, rtol=2e-2, atol=2e-2))
    print("KERNEL_OK")
</pallas_src>

<mosaic_0001>
module attributes {stable_mosaic.version = 11 : i64} {
  func.func @_fused_mlp_kernel(%arg0: i32, %arg1: memref<2x32xbf16, #tpu.memory_space<vmem>>, %arg2: memref<32x64xbf16, #tpu.memory_space<vmem>>, %arg3: memref<1x64xf32, #tpu.memory_space<vmem>>, %arg4: memref<64x32xbf16, #tpu.memory_space<vmem>>, %arg5: memref<1x32xf32, #tpu.memory_space<vmem>>, %arg6: memref<2x32xf32, #tpu.memory_space<vmem>>) attributes {dimension_semantics = [#tpu.dimension_semantics<parallel>], iteration_bounds = array<i64: 1>, scalar_prefetch = 0 : i64, scratch_operands = 0 : i64, tpu.core_type = #tpu.core_type<tc>, window_params = [{transform_indices = @transform_0, window_bounds = array<i64: 2, 32>}, {pipeline_mode = #tpu.pipeline_mode<synchronous>, transform_indices = @transform_1, window_bounds = array<i64: 32, 64>}, {pipeline_mode = #tpu.pipeline_mode<synchronous>, transform_indices = @transform_2, window_bounds = array<i64: 1, 64>}, {pipeline_mode = #tpu.pipeline_mode<synchronous>, transform_indices = @transform_3, window_bounds = array<i64: 64, 32>}, {pipeline_mode = #tpu.pipeline_mode<synchronous>, transform_indices = @transform_4, window_bounds = array<i64: 1, 32>}, {transform_indices = @transform_5, window_bounds = array<i64: 2, 32>}]} {
    %c0 = arith.constant 0 : index
    %c0_0 = arith.constant 0 : index
    %0 = vector.load %arg1[%c0, %c0_0] : memref<2x32xbf16, #tpu.memory_space<vmem>>, vector<2x32xbf16>
    %c0_1 = arith.constant 0 : index
    %c0_2 = arith.constant 0 : index
    %1 = vector.load %arg2[%c0_1, %c0_2] : memref<32x64xbf16, #tpu.memory_space<vmem>>, vector<32x64xbf16>
    %cst = arith.constant dense<0.000000e+00> : vector<2x64xf32>
    %2 = tpu.matmul %0, %1, %cst {dimension_numbers = #tpu.dot_dimension_numbers<[1], [0], [0], [1], [0, 0, 1, 1], [], []>} : vector<2x32xbf16>, vector<32x64xbf16>, vector<2x64xf32> -> vector<2x64xf32>
    %c0_3 = arith.constant 0 : index
    %c0_4 = arith.constant 0 : index
    %3 = vector.load %arg3[%c0_3, %c0_4] : memref<1x64xf32, #tpu.memory_space<vmem>>, vector<1x64xf32>
    %4 = vector.broadcast %3 : vector<1x64xf32> to vector<2x64xf32>
    %5 = arith.addf %2, %4 : vector<2x64xf32>
    %cst_5 = arith.constant 0.000000e+00 : f32
    %6 = vector.broadcast %cst_5 : f32 to vector<2x64xf32>
    %7 = arith.maximumf %5, %6 : vector<2x64xf32>
    %8 = arith.truncf %7 : vector<2x64xf32> to vector<2x64xbf16>
    %c0_6 = arith.constant 0 : index
    %c0_7 = arith.constant 0 : index
    %9 = vector.load %arg4[%c0_6, %c0_7] : memref<64x32xbf16, #tpu.memory_space<vmem>>, vector<64x32xbf16>
    %cst_8 = arith.constant dense<0.000000e+00> : vector<2x32xf32>
    %10 = tpu.matmul %8, %9, %cst_8 {dimension_numbers = #tpu.dot_dimension_numbers<[1], [0], [0], [1], [0, 0, 1, 1], [], []>} : vector<2x64xbf16>, vector<64x32xbf16>, vector<2x32xf32> -> vector<2x32xf32>
    %c0_9 = arith.constant 0 : index
    %c0_10 = arith.constant 0 : index
    %11 = vector.load %arg5[%c0_9, %c0_10] : memref<1x32xf32, #tpu.memory_space<vmem>>, vector<1x32xf32>
    %12 = vector.broadcast %11 : vector<1x32xf32> to vector<2x32xf32>
    %13 = arith.addf %10, %12 : vector<2x32xf32>
    %cst_11 = arith.constant 0.000000e+00 : f32
    %14 = vector.broadcast %cst_11 : f32 to vector<2x32xf32>
    %15 = arith.maximumf %13, %14 : vector<2x32xf32>
    %c0_12 = arith.constant 0 : index
    %c0_13 = arith.constant 0 : index
    %16 = vector.load %arg6[%c0_12, %c0_13] : memref<2x32xf32, #tpu.memory_space<vmem>>, vector<2x32xf32>
    tpu.vector_store %arg6[%c0_12, %c0_13], %15 {strides = array<i32>} : memref<2x32xf32, #tpu.memory_space<vmem>>, vector<2x32xf32>,
    return
  }
  func.func @transform_0(%arg0: i32) -> (i32, i32) {
    %c0_i32 = arith.constant 0 : i32
    %c0_i32_0 = arith.constant 0 : i32
    return %arg0, %c0_i32 : i32, i32
  }
  func.func @transform_1(%arg0: i32) -> (i32, i32) {
    %c0_i32 = arith.constant 0 : i32
    %c0_i32_0 = arith.constant 0 : i32
    %c0_i32_1 = arith.constant 0 : i32
    return %c0_i32, %c0_i32_0 : i32, i32
  }
  func.func @transform_2(%arg0: i32) -> (i32, i32) {
    %c0_i32 = arith.constant 0 : i32
    %c0_i32_0 = arith.constant 0 : i32
    %c0_i32_1 = arith.constant 0 : i32
    return %c0_i32, %c0_i32_0 : i32, i32
  }
  func.func @transform_3(%arg0: i32) -> (i32, i32) {
    %c0_i32 = arith.constant 0 : i32
    %c0_i32_0 = arith.constant 0 : i32
    %c0_i32_1 = arith.constant 0 : i32
    return %c0_i32, %c0_i32_0 : i32, i32
  }
  func.func @transform_4(%arg0: i32) -> (i32, i32) {
    %c0_i32 = arith.constant 0 : i32
    %c0_i32_0 = arith.constant 0 : i32
    %c0_i32_1 = arith.constant 0 : i32
    return %c0_i32, %c0_i32_0 : i32, i32
  }
  func.func @transform_5(%arg0: i32) -> (i32, i32) {
    %c0_i32 = arith.constant 0 : i32
    %c0_i32_0 = arith.constant 0 : i32
    return %arg0, %c0_i32 : i32, i32
  }
}

</mosaic_0001>

<bundles_post_ra>
// kernel: tpu_custom_call.1
= control target key start
LH: loop header
LB: loop body
LE: loop exit
PB: predicated region body
PF: predicated region fallthrough
CT: control target
= control target key end

     0   :  { %v261_v1 = vmov 0.0   ;;  %vm262_vm0 = vmmov 0   ;;  %vm46_vm1 = vcmask 261120   ;;  %s324_s0 = inlined_call_operand.vmem [shape: bf16[2,32], index: 0, kind: input, shape index: {}]   ;;  %s325_s1 = inlined_call_operand.vmem [shape: bf16[32,64], index: 1, kind: input, shape index: {}]   ;;  %s326_s2 = inlined_call_operand.vmem [shape: f32[1,64], index: 2, kind: input, shape index: {}]   ;;  %s327_s3 = inlined_call_operand.vmem [shape: bf16[64,32], index: 3, kind: input, shape index: {}]   ;;  %s328_s4 = inlined_call_operand.vmem [shape: f32[1,32], index: 4, kind: input, shape index: {}]   ;;  %s329_s5 = inlined_call_operand.hbm [shape: f32[2,32], index: 5, kind: output, shape index: {}]  }
   0x1   :  { %v233_v0 = vld [vmem:[%s325_s1 + $0x8] sm:$0xff]   ;;  %210 = vmatprep.subr.bf16.mxu0 %v261_v1  ;;  %218 = vmatprep.subr.bf16.mxu1 %v261_v1  ;;  %v234_v2 = vld [vmem:[%s325_s1] sm:$0xff]   ;;  %v235_v3 = vld [vmem:[%s327_s3 + $0x18] sm:$0xff]  }
   0x2   :  { %211 = vmatpush3.bf16.msra.mxu0 %v233_v0  ;;  %214 = vmatprep.mubr.msk.bf16.mxu0 %vm262_vm0, %v261_v1  ;;  %v236_v4 = vld [vmem:[%s327_s3 + $0x10] sm:$0xff]   ;;  %v22_v5 = vld [vmem:[%s324_s0] sm:$0x1] }
   0x3   :  { %212 = vmatprep.subr.bf16.mxu0 %v261_v1  ;;  %226 = vmatprep.mubr.msk.bf16.mxu1 %vm262_vm0, %v261_v1 }
   0x4   :  { %219 = vmatpush3.bf16.msra.mxu1 %v235_v3 }
   0x5   :  { %220 = vmatprep.subr.bf16.mxu1 %v261_v1 }
   0x6   :  { %213 = vmatpush3.bf16.msra.mxu0 %v234_v2 }
   0x7   :  { %10 = vsyncpa [#allocation3], 0  ;;  %v237_v6 = vld [vmem:[%s327_s3 + $0x8] sm:$0xff]   ;;  %v238_v7 = vld [vmem:[%s327_s3] sm:$0xff]   ;;  %vm131_vm2 = vcmask 523264   ;;  %s263_s3 = smov [#allocation2]  }
   0x8   :  { %221 = vmatpush3.bf16.msra.mxu1 %v236_v4  ;;  %v192_v8 = vld [vmem:[%s326_s2] ss:$0 sm:$0xff]  ;;  %s184_s9 = sshll.u32 %s263_s3, 4  ;;  %vm176_vm3 = vcmask 254976   ;;  %s185_s9 = int_to_ptr.vmem [resolvable:$true] %s184_s9 }
   0x9   :  { %215 = vmatmul.mubr.msk.bf16.vlgmr.msra.gmra.mxu0 %vm46_vm1, %v22_v5  ;;  %222 = vmatprep.subr.bf16.mxu1 %v261_v1  ;;  %v196_v16 = vld [vmem:[%s328_s4] ss:$0 sm:$0xff]  ;;  %s239_s2 = scalar_lea.vmem %s185_s9, 32  ;;  %p244_p1 = scmp.lt.s32.totalorder %s185_s9, %s185_s9 }
   0xa   :  { %p240_p0 = scmp.ne.s32.totalorder %s185_s9, %s239_s2  ;;  %p245_p2 = scmp.lt.s32.totalorder %s239_s2, %s239_s2 }
   0xc   :  { %223 = vmatpush3.bf16.msra.mxu1 %v237_v6  ;;  %p246_p3 = por %p245_p2, %p244_p1 }
   0xd   :  { %224 = vmatprep.subr.bf16.mxu1 %v261_v1 }
   0xe   :  { %p247_p4 = pnand %p246_p3, %p240_p0 }
  0x10   :  { %225 = vmatpush3.bf16.msra.mxu1 %v238_v7 }
  0xc9   :  { %v84_v9 = vpop.f32.mrf.mxu0 }
  0xca   :  { %v85_v10 = vadd.f32 %v192_v8, %v84_v9 }
  0xcb   :  { %v216_v11 = vpop.f32.mrf.mxu0 }
  0xcc   :  { %v90_v12 = vmax.f32 %v85_v10, 0.0 }
  0xcd   :  { %v87_v13 = vpop.f32.mrf.mxu0 }
  0xce   :  { %v91_v14 = vpack.c.bf16 %v90_v12, %v90_v12 }
  0xcf   :  { %v217_v15 = vpop.f32.mrf.mxu0 }
  0xd0   :  { %227 = vmatmul.mubr.msk.bf16.vlgmr.msra.gmra.mxu1 %vm131_vm2, %v91_v14 }
 0x190   :  { %v169_v17 = vpop.f32.mrf.mxu1 }
 0x191   :  { %v170_v18 = vadd.f32 %v196_v16, %v169_v17 }
 0x192   :  { %v228_v19 = vpop.f32.mrf.mxu1 }
 0x193   :  { %v175_v20 = vmax.f32 %v170_v18, 0.0 }
 0x194   :  { %v172_v21 = vpop.f32.mrf.mxu1 }
 0x195   :  { %177 = vst.msk [vmem:[#allocation2] sm:$0x3] %vm176_vm3, %v175_v20 }
 0x196   :  { %v229_v22 = vpop.f32.mrf.mxu1 }
 0x197   :  { %250 = shalt.err (!%p247_p4)
}
 0x198   :  { %187 = dma.vmem_to_hbm [thread:$0]  %s185_s9, 32, %s329_s5, [#allocation3]  }
 0x199   :  { %259 = dma.done.wait [#allocation3], 32  }
 0x19a   :  { %260 = vsyncadd [#allocation3], 4294967264 }
 0x19b   :  { %191 = vsyncpa [#allocation3], 1 }

</bundles_post_ra>
